<compile_context>
chip_gen: v7x
topology: tpu7x:2x2x1
jax: 0.10.0
libtpu: 0.0.40
codegen_flags: <defaults>
</compile_context>

<pallas_src>
import jax
import jax.numpy as jnp
from jax.experimental import pallas as pl
from jax.experimental.pallas import tpu as pltpu

_VMEM_LIMIT = None  # lazily derived from the actual TPU generation


def _vmem_limit_bytes():
    """Generation-dependent scoped-VMEM cap (leave ~25% headroom for the compiler)."""
    global _VMEM_LIMIT
    if _VMEM_LIMIT is None:
        cap = 64 * 1024 * 1024  # conservative default (v7x per-core VMEM)
        try:
            cap = int(pltpu.get_tpu_info().vmem_capacity_bytes)
        except Exception:
            pass
        _VMEM_LIMIT = int(max(32 << 20, min(cap * 3 // 4, 112 << 20)))
    return _VMEM_LIMIT


def _round_up(x, m):
    return ((x + m - 1) // m) * m


def _largest_divisor_tile(dim, candidates):
    for c in candidates:
        if dim % c == 0:
            return c
    return dim


def _pad2(arr, rows, cols, dtype):
    out = jnp.zeros((rows, cols), dtype)
    return out.at[: arr.shape[0], : arr.shape[1]].set(arr.astype(dtype))


# ---------------------------------------------------------------------------
# Kernel 1: tiled projection  pr = x @ [W_l | W_r] + [0 | b]
#           (bf16 inputs, f32 accumulate, 256-lane-wide output)
# ---------------------------------------------------------------------------
def _proj_kernel(x_ref, w_ref, b_ref, o_ref, acc_ref):
    @pl.when(pl.program_id(1) == 0)
    def _():
        acc_ref[...] = jnp.zeros_like(acc_ref)

    acc_ref[...] += jnp.dot(x_ref[...], w_ref[...],
                            preferred_element_type=jnp.float32)

    @pl.when(pl.program_id(1) == pl.num_programs(1) - 1)
    def _():
        o_ref[...] = (acc_ref[...] + b_ref[...]).astype(o_ref.dtype)


def _project(x, w, bias, *, out_dtype=jnp.bfloat16, vmem_limit=None):
    m, k = x.shape
    d_out = w.shape[1]
    tm = 512 if m >= 1024 else m // 2          # keep >=2 row tiles (v7x: 2 TCs)
    tk = _largest_divisor_tile(k, (512, 256, 128))
    return pl.pallas_call(
        _proj_kernel,
        out_shape=jax.ShapeDtypeStruct((m, d_out), out_dtype),
        grid_spec=pltpu.PrefetchScalarGridSpec(
            num_scalar_prefetch=0,
            grid=(m // tm, k // tk),
            in_specs=[
                pl.BlockSpec((tm, tk), lambda i, kk: (i, kk)),
                pl.BlockSpec((tk, d_out), lambda i, kk: (kk, 0)),
                pl.BlockSpec((1, d_out), lambda i, kk: (0, 0)),
            ],
            out_specs=pl.BlockSpec((tm, d_out), lambda i, kk: (i, 0)),
            scratch_shapes=[pltpu.VMEM((tm, d_out), jnp.float32)],
        ),
        compiler_params=pltpu.CompilerParams(
            dimension_semantics=("parallel", "arbitrary"),
            vmem_limit_bytes=vmem_limit or _vmem_limit_bytes(),
        ),
    )(x, w, bias)


# ---------------------------------------------------------------------------
# Kernel 2: SAGE layer
#   acc = B @ p                     (0/1 pattern B, K-reduction over its columns)
#   z   = acc * (1/deg) + r         (r = x @ W_r (+b), read from column-block 1 of pr)
#   layer 1 (fuse_next): out = relu(z) @ [W2l | W2r] + [0 | b2]
#   layer 2 (final)    : out = masked log_softmax(z)
# ---------------------------------------------------------------------------
def _make_sage_kernel(*, resident_p, tk, fuse_next, valid_cols):
    def kernel(*refs):
        if fuse_next:
            b_ref, p_ref, r_ref, s_ref, wn_ref, bn_ref, o_ref, acc_ref = refs
        else:
            b_ref, p_ref, r_ref, s_ref, o_ref, acc_ref = refs

        k = pl.program_id(1)

        @pl.when(k == 0)
        def _():
            acc_ref[...] = jnp.zeros_like(acc_ref)

        if resident_p:
            # p is fully resident in VMEM; slice the K-slab in-kernel.
            off = pl.multiple_of(k * tk, tk)
            p_blk = p_ref[pl.ds(off, tk), :]
        else:
            p_blk = p_ref[...]

        # neighbor aggregation in the small (lane-dense) output dim
        acc_ref[...] += jnp.dot(b_ref[...], p_blk,
                                preferred_element_type=jnp.float32)

        @pl.when(k == pl.num_programs(1) - 1)
        def _():
            # mean-normalize with the f32 per-row 1/deg, add the root path.
            z = acc_ref[...] * s_ref[...] + r_ref[...].astype(jnp.float32)
            if fuse_next:
                h = jnp.maximum(z, 0.0)          # ReLU; Dropout(0.6) = identity (infer)
                o_ref[...] = (jnp.dot(h.astype(wn_ref.dtype), wn_ref[...],
                                      preferred_element_type=jnp.float32)
                              + bn_ref[...]).astype(o_ref.dtype)
            else:
                # masked log_softmax over the first `valid_cols` lanes (f32 output)
                col = jax.lax.broadcasted_iota(jnp.int32, z.shape, 1)
                mask = col < valid_cols
                zm = jnp.where(mask, z, jnp.float32(-1e30))
                m = jnp.max(zm, axis=1, keepdims=True)
                e = jnp.where(mask, jnp.exp(zm - m), 0.0)
                lse = jnp.log(jnp.sum(e, axis=1, keepdims=True))
                o_ref[...] = jnp.where(mask, zm - m - lse, 0.0).astype(o_ref.dtype)

    return kernel


def _sage_layer(b_mat, pr, inv_deg, *, d_out, w_next=None, b_next=None,
                valid_cols=0, out_dtype=jnp.bfloat16, vmem_limit=None):
    n_pad = b_mat.shape[0]
    vmem_limit = vmem_limit or _vmem_limit_bytes()
    fuse_next = w_next is not None

    # Row tile: as large as possible while keeping >=2 row tiles (v7x megacore).
    if n_pad >= 4096 and n_pad % 1024 == 0:
        tm = 1024
    elif n_pad >= 1024:
        tm = 512
    else:
        tm = n_pad // 2
    # K slab of the 0/1 adjacency (reduction axis, streamed).
    tk = _largest_divisor_tile(n_pad, (2048, 1024, 512))

    # Hold p resident in VMEM when its (double-buffered) footprint is small.
    p_bytes = n_pad * d_out * 2  # bf16
    resident_p = 2 * p_bytes <= min(vmem_limit // 3, 24 * 1024 * 1024)

    if resident_p:
        p_spec = pl.BlockSpec((n_pad, d_out), lambda i, k: (0, 0))
    else:
        p_spec = pl.BlockSpec((tk, d_out), lambda i, k: (k, 0))

    in_specs = [
        pl.BlockSpec((tm, tk), lambda i, k: (i, k)),        # B tile (0/1 counts)
        p_spec,                                             # p = pr[:, :d_out]
        pl.BlockSpec((tm, d_out), lambda i, k: (i, 1)),     # r = pr[:, d_out:]
        pl.BlockSpec((tm, 1), lambda i, k: (i, 0)),         # 1/deg (f32)
    ]
    inputs = [b_mat, pr, pr, inv_deg]
    if fuse_next:
        d_next = w_next.shape[1]
        in_specs += [
            pl.BlockSpec((d_out, d_next), lambda i, k: (0, 0)),  # [W2l|W2r] resident
            pl.BlockSpec((1, d_next), lambda i, k: (0, 0)),      # [0|b2]   resident
        ]
        inputs += [w_next, b_next]
        out_width = d_next
    else:
        out_width = d_out

    kernel = _make_sage_kernel(resident_p=resident_p, tk=tk,
                               fuse_next=fuse_next, valid_cols=valid_cols)
    return pl.pallas_call(
        kernel,
        out_shape=jax.ShapeDtypeStruct((n_pad, out_width), out_dtype),
        grid_spec=pltpu.PrefetchScalarGridSpec(
            num_scalar_prefetch=0,
            grid=(n_pad // tm, n_pad // tk),
            in_specs=in_specs,
            out_specs=pl.BlockSpec((tm, out_width), lambda i, k: (i, 0)),
            scratch_shapes=[pltpu.VMEM((tm, d_out), jnp.float32)],
        ),
        compiler_params=pltpu.CompilerParams(
            dimension_semantics=("parallel", "arbitrary"),
            vmem_limit_bytes=vmem_limit,
        ),
    )(*inputs)


# ---------------------------------------------------------------------------
# Plain-JAX glue
# ---------------------------------------------------------------------------
def build_adjacency(edge_index, n_pad):
    """0/1 (count) pattern B[dst, src] in bf16 (exact) and f32 1/deg, padded to n_pad."""
    src, dst = edge_index[0], edge_index[1]
    counts = jnp.zeros((n_pad, n_pad), jnp.float32).at[dst, src].add(1.0)
    deg = jnp.zeros((n_pad, 1), jnp.float32).at[dst, 0].add(1.0)
    inv_deg = jnp.where(deg > 0, 1.0 / jnp.maximum(deg, 1.0), 0.0)
    return counts.astype(jnp.bfloat16), inv_deg


def graphsage_forward(x, edge_index, params):
    n, f_in = x.shape
    hidden = params["w1l"].shape[1]
    out_c = params["w2l"].shape[1]

    vmem_limit = _vmem_limit_bytes()

    n_pad = _round_up(n, 512)          # align to the MXU row tiles we use
    f_pad = _round_up(f_in, 128)
    h_pad = _round_up(hidden, 128)
    c_pad = _round_up(out_c, 128)

    b_mat, inv_deg = build_adjacency(edge_index, n_pad)
    x_p = _pad2(x, n_pad, f_pad, jnp.bfloat16)

    # Concatenated projection weights: columns [0:d) = W_l path, [d:2d) = W_r path.
    # The lin_l bias is attached to the root half (added after aggregation either way).
    w1 = jnp.zeros((f_pad, 2 * h_pad), jnp.bfloat16)
    w1 = w1.at[:f_in, :hidden].set(params["w1l"].astype(jnp.bfloat16))
    w1 = w1.at[:f_in, h_pad:h_pad + hidden].set(params["w1r"].astype(jnp.bfloat16))
    bias1 = jnp.zeros((1, 2 * h_pad), jnp.float32)
    bias1 = bias1.at[0, h_pad:h_pad + hidden].set(params["b1"].reshape(-1))

    w2 = jnp.zeros((h_pad, 2 * c_pad), jnp.bfloat16)
    w2 = w2.at[:hidden, :out_c].set(params["w2l"].astype(jnp.bfloat16))
    w2 = w2.at[:hidden, c_pad:c_pad + out_c].set(params["w2r"].astype(jnp.bfloat16))
    bias2 = jnp.zeros((1, 2 * c_pad), jnp.float32)
    bias2 = bias2.at[0, c_pad:c_pad + out_c].set(params["b2"].reshape(-1))

    # ---- layer-1 projection: pr1 = x @ [W1l | W1r] + [0 | b1] ----
    pr1 = _project(x_p, w1, bias1, out_dtype=jnp.bfloat16, vmem_limit=vmem_limit)

    # ---- SAGEConv 1 + ReLU (+ dropout=identity), fused with layer-2 projection:
    #      pr2 = relu((1/deg)*(B @ p1) + r1) @ [W2l | W2r] + [0 | b2] ----
    pr2 = _sage_layer(b_mat, pr1, inv_deg, d_out=h_pad,
                      w_next=w2, b_next=bias2,
                      out_dtype=jnp.bfloat16, vmem_limit=vmem_limit)

    # ---- SAGEConv 2 + masked log_softmax: z = logsoftmax((1/deg)*(B @ p2) + r2) ----
    z = _sage_layer(b_mat, pr2, inv_deg, d_out=c_pad,
                    valid_cols=out_c, out_dtype=jnp.float32,
                    vmem_limit=vmem_limit)

    return z[:n, :out_c]


def init_params(key, in_features, hidden_channels, out_channels):
    ks = jax.random.split(key, 6)

    def glorot(k, fan_in, fan_out):
        lim = (6.0 / (fan_in + fan_out)) ** 0.5
        return jax.random.uniform(k, (fan_in, fan_out), jnp.float32, -lim, lim)

    return {
        "w1l": glorot(ks[0], in_features, hidden_channels),   # lin_l weight (agg path)
        "w1r": glorot(ks[1], in_features, hidden_channels),   # lin_r weight (root path)
        "b1":  jnp.zeros((1, hidden_channels), jnp.float32),  # lin_l bias
        "w2l": glorot(ks[2], hidden_channels, out_channels),
        "w2r": glorot(ks[3], hidden_channels, out_channels),
        "b2":  jnp.zeros((1, out_channels), jnp.float32),
    }


def _reference_forward(x, edge_index, params):
    """Pure-JAX f32 reference of the same semantics."""
    n = x.shape[0]
    src, dst = edge_index[0], edge_index[1]
    a = jnp.zeros((n, n), jnp.float32).at[dst, src].add(1.0)
    deg = jnp.sum(a, axis=1, keepdims=True)
    a = jnp.where(deg > 0, a / jnp.maximum(deg, 1.0), 0.0)
    h = (a @ x) @ params["w1l"] + x @ params["w1r"] + params["b1"]
    h = jnp.maximum(h, 0.0)
    z = (a @ h) @ params["w2l"] + h @ params["w2r"] + params["b2"]
    return jax.nn.log_softmax(z, axis=1)


if __name__ == "__main__":
    key = jax.random.PRNGKey(0)
    k_x, k_e, k_p = jax.random.split(key, 3)

    num_nodes = 16
    in_features = 8
    hidden_channels = 32
    out_channels = 4
    num_edges = 40

    x = jax.random.normal(k_x, (num_nodes, in_features), jnp.float32)
    edge_index = jax.random.randint(k_e, (2, num_edges), 0, num_nodes, jnp.int32)

    params = init_params(k_p, in_features, hidden_channels, out_channels)

    out = graphsage_forward(x, edge_index, params)
    out = jax.block_until_ready(out)

    assert out.shape == (num_nodes, out_channels)
    # log_softmax rows must sum to ~1 in prob space
    assert bool(jnp.all(jnp.abs(jnp.sum(jnp.exp(out), axis=1) - 1.0) < 1e-4))

    # compare against the pure-JAX f32 reference (bf16 MXU streams -> loose tolerance)
    ref = _reference_forward(x, edge_index, params)
    assert bool(jnp.max(jnp.abs(out - ref)) < 1e-1)

    print("KERNEL_OK")
</pallas_src>

<mosaic_0001>
module attributes {stable_mosaic.version = 11 : i64} {
  func.func @_proj_kernel(%arg0: i32, %arg1: i32, %arg2: memref<256x128xbf16, #tpu.memory_space<vmem>>, %arg3: memref<128x256xbf16, #tpu.memory_space<vmem>>, %arg4: memref<1x256xf32, #tpu.memory_space<vmem>>, %arg5: memref<256x256xbf16, #tpu.memory_space<vmem>>, %arg6: memref<256x256xf32, #tpu.memory_space<vmem>>) attributes {dimension_semantics = [#tpu.dimension_semantics<parallel>, #tpu.dimension_semantics<arbitrary>], iteration_bounds = array<i64: 2, 1>, scalar_prefetch = 0 : i64, scratch_operands = 1 : i64, tpu.core_type = #tpu.core_type<tc>, window_params = [{transform_indices = @transform_0, window_bounds = array<i64: 256, 128>}, {transform_indices = @transform_1, window_bounds = array<i64: 128, 256>}, {pipeline_mode = #tpu.pipeline_mode<synchronous>, transform_indices = @transform_2, window_bounds = array<i64: 1, 256>}, {transform_indices = @transform_3, window_bounds = array<i64: 256, 256>}]} {
    %c0_i32 = arith.constant 0 : i32
    %0 = arith.cmpi eq, %arg1, %c0_i32 : i32
    %1 = arith.extui %0 : i1 to i32
    %c0_i32_0 = arith.constant 0 : i32
    %2 = arith.cmpi ne, %1, %c0_i32_0 : i32
    scf.if %2 {
      %cst_10 = arith.constant 0.000000e+00 : f32
      %12 = vector.broadcast %cst_10 : f32 to vector<256x256xf32>
      %c0_11 = arith.constant 0 : index
      %c0_12 = arith.constant 0 : index
      %13 = vector.load %arg6[%c0_11, %c0_12] : memref<256x256xf32, #tpu.memory_space<vmem>>, vector<256x256xf32>
      tpu.vector_store %arg6[%c0_11, %c0_12], %12 {strides = array<i32>} : memref<256x256xf32, #tpu.memory_space<vmem>>, vector<256x256xf32>,
    } else {
    }
    %c0 = arith.constant 0 : index
    %c0_1 = arith.constant 0 : index
    %3 = vector.load %arg6[%c0, %c0_1] : memref<256x256xf32, #tpu.memory_space<vmem>>, vector<256x256xf32>
    %c0_2 = arith.constant 0 : index
    %c0_3 = arith.constant 0 : index
    %4 = vector.load %arg2[%c0_2, %c0_3] : memref<256x128xbf16, #tpu.memory_space<vmem>>, vector<256x128xbf16>
    %c0_4 = arith.constant 0 : index
    %c0_5 = arith.constant 0 : index
    %5 = vector.load %arg3[%c0_4, %c0_5] : memref<128x256xbf16, #tpu.memory_space<vmem>>, vector<128x256xbf16>
    %cst = arith.constant dense<0.000000e+00> : vector<256x256xf32>
    %6 = tpu.matmul %4, %5, %cst {dimension_numbers = #tpu.dot_dimension_numbers<[1], [0], [0], [1], [0, 0, 1, 1], [], []>} : vector<256x128xbf16>, vector<128x256xbf16>, vector<256x256xf32> -> vector<256x256xf32>
    %7 = arith.addf %3, %6 : vector<256x256xf32>
    %c0_6 = arith.constant 0 : index
    %c0_7 = arith.constant 0 : index
    %8 = vector.load %arg6[%c0_6, %c0_7] : memref<256x256xf32, #tpu.memory_space<vmem>>, vector<256x256xf32>
    tpu.vector_store %arg6[%c0_6, %c0_7], %7 {strides = array<i32>} : memref<256x256xf32, #tpu.memory_space<vmem>>, vector<256x256xf32>,
    %c0_i32_8 = arith.constant 0 : i32
    %9 = arith.cmpi eq, %arg1, %c0_i32_8 : i32
    %10 = arith.extui %9 : i1 to i32
    %c0_i32_9 = arith.constant 0 : i32
    %11 = arith.cmpi ne, %10, %c0_i32_9 : i32
    scf.if %11 {
      %c0_10 = arith.constant 0 : index
      %c0_11 = arith.constant 0 : index
      %12 = vector.load %arg6[%c0_10, %c0_11] : memref<256x256xf32, #tpu.memory_space<vmem>>, vector<256x256xf32>
      %c0_12 = arith.constant 0 : index
      %c0_13 = arith.constant 0 : index
      %13 = vector.load %arg4[%c0_12, %c0_13] : memref<1x256xf32, #tpu.memory_space<vmem>>, vector<1x256xf32>
      %14 = vector.broadcast %13 : vector<1x256xf32> to vector<256x256xf32>
      %15 = arith.addf %12, %14 : vector<256x256xf32>
      %16 = arith.truncf %15 : vector<256x256xf32> to vector<256x256xbf16>
      %c0_14 = arith.constant 0 : index
      %c0_15 = arith.constant 0 : index
      %17 = vector.load %arg5[%c0_14, %c0_15] : memref<256x256xbf16, #tpu.memory_space<vmem>>, vector<256x256xbf16>
      tpu.vector_store %arg5[%c0_14, %c0_15], %16 {strides = array<i32>} : memref<256x256xbf16, #tpu.memory_space<vmem>>, vector<256x256xbf16>,
    } else {
    }
    return
  }
  func.func @transform_0(%arg0: i32, %arg1: i32) -> (i32, i32) {
    %c0_i32 = arith.constant 0 : i32
    return %arg0, %arg1 : i32, i32
  }
  func.func @transform_1(%arg0: i32, %arg1: i32) -> (i32, i32) {
    %c0_i32 = arith.constant 0 : i32
    %c0_i32_0 = arith.constant 0 : i32
    return %arg1, %c0_i32 : i32, i32
  }
  func.func @transform_2(%arg0: i32, %arg1: i32) -> (i32, i32) {
    %c0_i32 = arith.constant 0 : i32
    %c0_i32_0 = arith.constant 0 : i32
    %c0_i32_1 = arith.constant 0 : i32
    return %c0_i32, %c0_i32_0 : i32, i32
  }
  func.func @transform_3(%arg0: i32, %arg1: i32) -> (i32, i32) {
    %c0_i32 = arith.constant 0 : i32
    %c0_i32_0 = arith.constant 0 : i32
    return %arg0, %c0_i32 : i32, i32
  }
}

</mosaic_0001>

<bundles_post_ra>
// kernel: tpu_custom_call.1
= control target key start
LH: loop header
LB: loop body
LE: loop exit
PB: predicated region body
PF: predicated region fallthrough
CT: control target
= control target key end

     0   :  { %8 = vsyncpa [#allocation4], 0  ;;  %s2175_s0 = inlined_call_operand.hbm [shape: bf16[512,128], index: 0, kind: input, shape index: {}]   ;;  %s2176_s1 = inlined_call_operand.hbm [shape: bf16[128,256], index: 1, kind: input, shape index: {}]   ;;  %s2177_s2 = inlined_call_operand.vmem [shape: f32[1,256], index: 2, kind: input, shape index: {}]   ;;  %s2178_s3 = inlined_call_operand.hbm [shape: bf16[512,256], index: 3, kind: output, shape index: {}]  }
   0x1   :  { %10 = vsyncpa [#allocation4 + $0x1], 0 }
   0x2   :  { %11 = vsyncpa [#allocation7], 0 }
   0x3   :  { %12 = vsyncpa [#allocation5], 0 }
   0x4   :  { %14 = vsyncpa [#allocation5 + $0x1], 0  ;;  %s1815_s12 = smov 0   ;;  %s1817_s13 = smov 0  }
   0x5   :  { %s1819_s14 = smov 0   ;;  %s1821_s15 = smov 0  }
   0x6   :  { %s1823_s16 = smov 0   ;;  %s1825_s17 = smov 0  }
   0x7 LB: > { %s1386_s18 = sadd.s32 4294967295, %s1783_s17   ;;  %s1387_s19 = sadd.s32 4294967294, %s1783_s17   ;;  %s1783_s17 = sphi %s1825_s17, %s20_s17   ;;  %s1779_s16 = sphi %s1823_s16, %s2202_s16   ;;  %s1775_s15 = sphi %s1821_s15, %s2201_s15   ;;  %s1771_s14 = sphi %s1819_s14, %s2200_s14   ;;  %s1767_s13 = sphi %s1817_s13, %s2199_s13   ;;  %s1763_s12 = sphi %s1815_s12, %s2198_s12  }
   0x8   : > { %p54_p0 = scmp.ne.s32.totalorder %s1767_s13, %s1763_s12  ;;  %p1849_p1 = scmp.eq.s32.totalorder %s1386_s18, 0 }
   0x9   : > { %p1853_p2 = scmp.eq.s32.totalorder %s1386_s18, 1  ;;  %p131_p3 = scmp.eq.s32.totalorder %s1387_s19, 1 }
   0xa   : > { %s2183_s20 = scalar_select %p1849_p1, 1, 0 }
   0xb   : > { %s2184_s21 = scalar_select %p1853_p2, 1, 0 }
   0xc   : > { %p1859_p4 = por %p1849_p1, %p54_p0  ;;  %p1388_p5 = scmp.ge.s32.totalorder %s1783_s17, 1 }
   0xd   : > { %p1864_p6 = por %p131_p3, %p54_p0  ;;  %p138_p7 = scmp.lt.s32.totalorder %s1783_s17, 3 }
   0xe   : > { %s2185_s22 = scalar_select %p1859_p4, 1, 0 }
   0xf   : > { %s2186_s23 = scalar_select %p1864_p6, 1, 0 }
  0x10   : > { %p1869_p8 = pnand %p1388_p5, %p138_p7  ;;  %s1785_s25 = smov [#allocation6]  }
  0x11   : > { %s154_s26 = sshll.u32 %s1785_s25, 4  ;;  %s32_s28 = sadd.s32 1, %s1779_s16  ;;  %s155_s26 = int_to_ptr.vmem [resolvable:$true] %s154_s26 }
  0x12   : > { %s2187_s24 = scalar_select %p1869_p8, 1, 0 }
  0x13   : > { %p1527_p9 = pneg %p1869_p8  ;;  %s1639_s4 = scalar_lea.hbm %s2176_s1, 2048 }
  0x14   : > { %p1640_p12 = scmp.ne.s32.totalorder %s2176_s1, %s1639_s4  ;;  %p1646_p5 = scmp.lt.u32.totalorder %s1639_s4, %s2176_s1 }
  0x15   : > { %p1878_p11 = pnand %p1527_p9, %p1849_p1 }
  0x17   : > { %p1641_p13 = pneg %p1878_p11 }
  0x19   : > { %p1642_p0 = pnand %p1641_p13, %p1640_p12 }
  0x1b   : > { %p1643_p3 = pneg %p1642_p0 }
  0x1d   : > { %p1648_p7 = pnand %p1646_p5, %p1643_p3 }
  0x1f   : > { %1651 = shalt.err (!%p1648_p7)
}
  0x20   : > { %s1652_s9 = scalar_lea.vmem %s155_s26, 2048  ;;  %p1660_p1 = scmp.lt.s32.totalorder %s155_s26, %s155_s26 }
  0x21   : > { %p1653_p9 = scmp.ne.s32.totalorder %s155_s26, %s1652_s9  ;;  %p1661_p4 = scmp.lt.s32.totalorder %s1652_s9, %s1652_s9 }
  0x23   : > { %p1655_p10 = pnand %p1653_p9, %p1641_p13  ;;  %p1662_p8 = por %p1661_p4, %p1660_p1 }
  0x25   : > { %p1656_p6 = pneg %p1655_p10 }
  0x27   : > { %p1663_p2 = pnand %p1662_p8, %p1656_p6 }
  0x29   : > { %1666 = shalt.err (!%p1663_p2)
}
  0x2a   : > { %s1786_s10 = smov 128   ;;  %s1787_s11 = smov 8  }
  0x2b   : > { %1530 = dma.hbm_to_vmem [thread:$0]  (!%p1878_p11), %s2176_s1, 2048, %s155_s26, [#allocation7], %s1786_s10, %s1786_s10, %s1787_s11  }
  0x2c   : > { %p34_p1 = scmp.ge.s32.totalorder %s32_s28, 2  ;;  %s41_s25 = sadd.s32 1, %s1771_s14 }
  0x2d   : > { %p48_p2 = scmp.ne.s32.totalorder %s1771_s14, %s1767_s13  ;;  %p49_p4 = scmp.eq.s32.totalorder %s1783_s17, 0 }
  0x2e   : > { %s2204_s28 = smov (%p34_p1, %s32_s28), 0  ;;  %p2190_p8 = scmp.ne.s32.totalorder %s2184_s21, 0 }
  0x2f   : > { %p1905_p6 = por %p49_p4, %p48_p2  ;;  %s36_s27 = ssub.s32 %s1779_s16, %s2204_s28 }
  0x30   : > { %p1911_p10 = por %p2190_p8, %p48_p2  ;;  %p1540_p12 = scmp.lt.s32.totalorder %s1783_s17, 2 }
  0x31   : > { %p39_p11 = scmp.eq.s32.totalorder %s36_s27, 0  ;;  %s171_s26 = sand.u32 1, %s1771_s14  }
  0x32   : > { %s1391_s4 = sshll.u32 %s171_s26, 7  ;;  %s1468_s6 = sshll.u32 %s1779_s16, 11 }
  0x33   : > { %s1920_s5 = scalar_select %p39_p11, %s1771_s14, %s41_s25  }
  0x34   : > { %s1926_s9 = scalar_lea.hbm %s2175_s0, %s1468_s6  ;;  %s175_s21 = scalar_lea.vmem [#allocation3], %s1391_s4 }
  0x35   : > { %s183_s10 = sshll.u32 %s175_s21, 4  ;;  %p1932_p13 = pnand %p1540_p12, %p1905_p6  ;;  %s1928_s10 = int_to_ptr.vmem [resolvable:$true] %s183_s10 }
  0x36   : > { %s1936_s18 = scalar_lea.sflag [#allocation4], %s171_s26  ;;  %s1667_s19 = scalar_lea.hbm %s1926_s9, 2048 }
  0x37   : > { %p1668_p0 = scmp.ne.s32.totalorder %s1926_s9, %s1667_s19  ;;  %p1669_p3 = pneg %p1932_p13 }
  0x38   : > { %s1672_s29 = scalar_lea.hbm %s2175_s0, 4096  ;;  %p1673_p9 = scmp.lt.u32.totalorder %s1926_s9, %s2175_s0 }
  0x39   : > { %p1670_p5 = pnand %p1669_p3, %p1668_p0  ;;  %p1674_p1 = scmp.lt.u32.totalorder %s1672_s29, %s1667_s19 }
  0x3a   : > { %p1676_p4 = scmp.lt.u32.totalorder %s1667_s19, %s1926_s9 }
  0x3b   : > { %p1671_p7 = pneg %p1670_p5  ;;  %p1675_p2 = por %p1674_p1, %p1673_p9 }
  0x3d   : > { %p1677_p6 = por %p1676_p4, %p1675_p2 }
  0x3f   : > { %p1678_p8 = pnand %p1677_p6, %p1671_p7 }
  0x41   : > { %1681 = shalt.err (!%p1678_p8)
}
  0x42   : > { %s1682_s26 = scalar_lea.vmem %s1928_s10, 2048  ;;  %s1788_s7 = smov [#allocation3]  }
  0x43   : > { %p1683_p12 = scmp.ne.s32.totalorder %s1928_s10, %s1682_s26  ;;  %s1687_s8 = sshll.u32 %s1788_s7, 4  ;;  %s1688_s8 = int_to_ptr.vmem [resolvable:$false] %s1687_s8 }
  0x44   : > { %s1689_s21 = scalar_lea.vmem %s1688_s8, 4096  ;;  %p1690_p5 = scmp.lt.s32.totalorder %s1928_s10, %s1688_s8 }
  0x45   : > { %p1685_p11 = pnand %p1683_p12, %p1669_p3  ;;  %p1691_p9 = scmp.lt.s32.totalorder %s1689_s21, %s1682_s26 }
  0x47   : > { %p1686_p0 = pneg %p1685_p11  ;;  %p1692_p1 = por %p1691_p9, %p1690_p5 }
  0x49   : > { %p1693_p2 = pnand %p1692_p1, %p1686_p0 }
  0x4b   : > { %1696 = shalt.err (!%p1693_p2)
}
  0x4c   : > { %s1789_s19 = smov 64   ;;  %s1790_s25 = smov 4  }
  0x4d   : > { %1534 = dma.hbm_to_vmem [thread:$0]  (!%p1932_p13), %s1926_s9, 2048, %s1928_s10, %s1936_s18, %s1789_s19, %s1789_s19, %s1790_s25  }
  0x4e   : > { %p2193_p3 = scmp.ne.s32.totalorder %s2187_s24, 0 }
  0x4f   : > { %s1967_s27 = sand.u32 (!%p2193_p3), 1, %s1767_s13   ;;  %p2194_p7 = scmp.ne.s32.totalorder (!%p2193_p3), %s2185_s22, 0 }
  0x50   : > { %195 = sbr.rel (%p2193_p3) target bundleno = 415 (0x19f), region = 32  ;;  %s1395_s29 = sshll.u32 (!%p2193_p3), %s1967_s27, 7 }
  0x51   : > { %s198_s4 = scalar_lea.sflag (!%p2193_p3), [#allocation4], %s1967_s27  ;;  %s1971_s6 = scalar_lea.vmem (!%p2193_p3), [#allocation3], %s1395_s29 }
  0x57   : > { %1750 = dma.done.wait (%p2194_p7), %s198_s4, 2048  }
  0x58   : > { %1752 = vsyncadd (%p2194_p7), %s198_s4, 4294965248  ;;  %p2195_p13 = scmp.ne.s32.totalorder %s2183_s20, 0 }
  0x5a   : > { %1754 = dma.done.wait (%p2195_p13), [#allocation7], 2048  }
  0x5b   : > { %1756 = vsyncadd (%p2195_p13), [#allocation7], 4294965248  ;;  %v1791_v0 = vmov 0   ;;  %v1599_v1 = vld [vmem:[#allocation6 + $0x4] ss:$8 sps:$4 sm:$0xff]   ;;  %v1627_v21 = vld [vmem:[%s1971_s6 + $0x10] sm:$0xff]   ;;  %v978_v33 = vlaneseq }
  0x5c   : > { %620 = vmatprep.mubr.bf16.mxu0 %v1791_v0  ;;  %700 = vmatprep.mubr.bf16.mxu1 %v1791_v0  ;;  %v1601_v2 = vld [vmem:[#allocation6] ss:$8 sps:$4 sm:$0xff]   ;;  %v1602_v3 = vld [vmem:[#allocation6 + $0x14] ss:$8 sps:$4 sm:$0xff]   ;;  %v1604_v4 = vld [vmem:[#allocation6 + $0x10] ss:$8 sps:$4 sm:$0xff]  }
  0x5d   : > { %588 = vmatprep.subr.bf16.mxu0 %v1599_v1  ;;  %1503 = vmatprep.subr.bf16.mxu1 %v1599_v1  ;;  %v1605_v5 = vld [vmem:[#allocation6 + $0x24] ss:$8 sps:$4 sm:$0xff]   ;;  %v1607_v6 = vld [vmem:[#allocation6 + $0x20] ss:$8 sps:$4 sm:$0xff]   ;;  %v1608_v7 = vld [vmem:[#allocation6 + $0x34] ss:$8 sps:$4 sm:$0xff]  }
  0x5e   : > { %589 = vmatpush1.bf16.msra.mxu0 %v1601_v2  ;;  %1511 = vmatpush1.bf16.msra.mxu1 %v1601_v2  ;;  %v1610_v8 = vld [vmem:[#allocation6 + $0x30] ss:$8 sps:$4 sm:$0xff]   ;;  %v1611_v9 = vld [vmem:[#allocation6 + $0x44] ss:$8 sps:$4 sm:$0xff]   ;;  %v1613_v10 = vld [vmem:[#allocation6 + $0x40] ss:$8 sps:$4 sm:$0xff]  }
  0x5f   : > { %590 = vmatprep.subr.bf16.mxu0 %v1602_v3  ;;  %1504 = vmatprep.subr.bf16.mxu1 %v1602_v3  ;;  %v1614_v11 = vld [vmem:[#allocation6 + $0x54] ss:$8 sps:$4 sm:$0xff]   ;;  %v1616_v12 = vld [vmem:[#allocation6 + $0x50] ss:$8 sps:$4 sm:$0xff]   ;;  %v1617_v13 = vld [vmem:[#allocation6 + $0x64] ss:$8 sps:$4 sm:$0xff]  }
  0x60   : > { %v1619_v14 = vld [vmem:[#allocation6 + $0x60] ss:$8 sps:$4 sm:$0xff]   ;;  %v1620_v15 = vld [vmem:[#allocation6 + $0x74] ss:$8 sps:$4 sm:$0xff]   ;;  %v1622_v16 = vld [vmem:[#allocation6 + $0x70] ss:$8 sps:$4 sm:$0xff]  }
  0x61   : > { %v1623_v17 = vld [vmem:[%s1971_s6] sm:$0xff]   ;;  %v1625_v19 = vld [vmem:[%s1971_s6 + $0x8] sm:$0xff]   ;;  %v1628_v22 = vld [vmem:[%s1971_s6 + $0x50] sm:$0xff]   ;;  %v979_v34 = vshrl.u32 %v978_v33, 7  ;;  %s1397_s24 = sshll.u32 %s1967_s27, 8  ;;  %s1502_s10 = sshll.u32 %s1775_s15, 12 }
  0x62   : > { %591 = vmatpush1.bf16.msra.mxu0 %v1604_v4  ;;  %1512 = vmatpush1.bf16.msra.mxu1 %v1604_v4  ;;  %v1624_v18 = vld [vmem:[%s1971_s6 + $0x40] sm:$0xff]   ;;  %v1626_v20 = vld [vmem:[%s1971_s6 + $0x48] sm:$0xff]   ;;  %v1629_v23 = vld [vmem:[%s1971_s6 + $0x18] sm:$0xff]   ;;  %s2029_s9 = scalar_lea.vmem [#allocation8], %s1397_s24  ;;  %s2120_s15 = scalar_lea.hbm %s2178_s3, %s1502_s10 }
  0x63   : > { %592 = vmatprep.subr.bf16.mxu0 %v1605_v5  ;;  %1505 = vmatprep.subr.bf16.mxu1 %v1605_v5  ;;  %v1630_v24 = vld [vmem:[%s1971_s6 + $0x58] sm:$0xff]   ;;  %v1631_v25 = vld [vmem:[%s1971_s6 + $0x20] sm:$0xff]   ;;  %v1633_v27 = vld [vmem:[%s1971_s6 + $0x28] sm:$0xff]   ;;  %v980_v35 = vsub.s32 0, %v979_v34  ;;  %v984_v37 = vsub.s32 1, %v979_v34  ;;  %s1291_s11 = sshll.u32 %s2029_s9, 4  ;;  %s2122_s11 = int_to_ptr.vmem [resolvable:$true] %s1291_s11 }
  0x64   : > { %v1632_v26 = vld [vmem:[%s1971_s6 + $0x60] sm:$0xff]   ;;  %v1634_v28 = vld [vmem:[%s1971_s6 + $0x68] sm:$0xff]   ;;  %v1635_v29 = vld [vmem:[%s1971_s6 + $0x30] sm:$0xff]   ;;  %s1277_s7 = scalar_lea.sflag [#allocation5], %s1967_s27  ;;  %s1697_s8 = scalar_lea.vmem %s2122_s11, 4096 }
  0x65   : > { %v1636_v30 = vld [vmem:[%s1971_s6 + $0x70] sm:$0xff]   ;;  %v1637_v31 = vld [vmem:[%s1971_s6 + $0x38] sm:$0xff]   ;;  %v976_v36 = vld [vmem:[%s2177_s2] sm:$0x3]  ;;  %p1698_p4 = scmp.ne.s32.totalorder %s2122_s11, %s1697_s8  ;;  %s1792_s21 = smov [#allocation8]  }
  0x66   : > { %593 = vmatpush1.bf16.msra.mxu0 %v1607_v6  ;;  %1513 = vmatpush1.bf16.msra.mxu1 %v1607_v6  ;;  %v1638_v32 = vld [vmem:[%s1971_s6 + $0x78] sm:$0xff]   ;;  %v2016_v38 = vrot.slane %v976_v36, %v980_v35  ;;  %v2018_v39 = vrot.slane %v976_v36, %v984_v37  ;;  %s1701_s19 = sshll.u32 %s1792_s21, 4  ;;  %s1702_s19 = int_to_ptr.vmem [resolvable:$false] %s1701_s19 }
  0x67   : > { %594 = vmatprep.subr.bf16.mxu0 %v1608_v7  ;;  %1506 = vmatprep.subr.bf16.mxu1 %v1608_v7  ;;  %p1699_p6 = pnand %p1698_p4, %p1911_p10  ;;  %s1703_s25 = scalar_lea.vmem %s1702_s19, 8192 }
  0x68   : > { %p1704_p12 = scmp.lt.s32.totalorder %s2122_s11, %s1702_s19  ;;  %p1705_p11 = scmp.lt.s32.totalorder %s1703_s25, %s1697_s8 }
  0x69   : > { %p1700_p8 = pneg %p1699_p6 }
  0x6a   : > { %595 = vmatpush1.bf16.msra.mxu0 %v1610_v8  ;;  %1514 = vmatpush1.bf16.msra.mxu1 %v1610_v8  ;;  %p1706_p0 = por %p1705_p11, %p1704_p12 }
  0x6b   : > { %596 = vmatprep.subr.bf16.mxu0 %v1611_v9  ;;  %1507 = vmatprep.subr.bf16.mxu1 %v1611_v9 }
  0x6c   : > { %p1707_p5 = pnand %p1706_p0, %p1700_p8 }
  0x6e   : > { %597 = vmatpush1.bf16.msra.mxu0 %v1613_v10  ;;  %1515 = vmatpush1.bf16.msra.mxu1 %v1613_v10 }
  0x6f   : > { %598 = vmatprep.subr.bf16.mxu0 %v1614_v11  ;;  %1508 = vmatprep.subr.bf16.mxu1 %v1614_v11 }
  0x72   : > { %599 = vmatpush1.bf16.msra.mxu0 %v1616_v12  ;;  %1516 = vmatpush1.bf16.msra.mxu1 %v1616_v12 }
  0x73   : > { %600 = vmatprep.subr.bf16.mxu0 %v1617_v13  ;;  %1509 = vmatprep.subr.bf16.mxu1 %v1617_v13 }
  0x76   : > { %601 = vmatpush1.bf16.msra.mxu0 %v1619_v14  ;;  %1517 = vmatpush1.bf16.msra.mxu1 %v1619_v14 }
  0x77   : > { %602 = vmatprep.subr.bf16.mxu0 %v1620_v15  ;;  %1510 = vmatprep.subr.bf16.mxu1 %v1620_v15 }
  0x7a   : > { %603 = vmatpush1.bf16.msra.mxu0 %v1622_v16  ;;  %1518 = vmatpush1.bf16.msra.mxu1 %v1622_v16 }
  0x7d   : > { %621 = vmatmul.mubr.bf16.vlgmr.msra.gmra.mrb[0].mxu0 %v1623_v17  ;;  %701 = vmatmul.mubr.bf16.vlgmr.msra.gmra.mrb[0].mxu1 %v1624_v18 }
  0x7e   : > { %630 = vmatprep.mubr.bf16.mxu0 %v1791_v0  ;;  %710 = vmatprep.mubr.bf16.mxu1 %v1791_v0 }
  0x85   : > { %631 = vmatmul.mubr.bf16.gmra.mrb[4].mxu0 %v1625_v19  ;;  %711 = vmatmul.mubr.bf16.gmra.mrb[4].mxu1 %v1626_v20 }
  0x86   : > { %640 = vmatprep.mubr.bf16.mxu0 %v1791_v0  ;;  %720 = vmatprep.mubr.bf16.mxu1 %v1791_v0 }
  0x8d   : > { %641 = vmatmul.mubr.bf16.gmra.mrb[8].mxu0 %v1627_v21  ;;  %721 = vmatmul.mubr.bf16.gmra.mrb[8].mxu1 %v1628_v22 }
  0x8e   : > { %650 = vmatprep.mubr.bf16.mxu0 %v1791_v0  ;;  %730 = vmatprep.mubr.bf16.mxu1 %v1791_v0 }
  0x95   : > { %651 = vmatmul.mubr.bf16.gmra.mrb[12].mxu0 %v1629_v23  ;;  %731 = vmatmul.mubr.bf16.gmra.mrb[12].mxu1 %v1630_v24 }
  0x96   : > { %660 = vmatprep.mubr.bf16.mxu0 %v1791_v0  ;;  %740 = vmatprep.mubr.bf16.mxu1 %v1791_v0 }
  0x9d   : > { %661 = vmatmul.mubr.bf16.gmra.mrb[16].mxu0 %v1631_v25  ;;  %741 = vmatmul.mubr.bf16.gmra.mrb[16].mxu1 %v1632_v26 }
  0x9e   : > { %670 = vmatprep.mubr.bf16.mxu0 %v1791_v0  ;;  %750 = vmatprep.mubr.bf16.mxu1 %v1791_v0 }
  0xa5   : > { %671 = vmatmul.mubr.bf16.gmra.mrb[20].mxu0 %v1633_v27  ;;  %751 = vmatmul.mubr.bf16.gmra.mrb[20].mxu1 %v1634_v28 }
  0xa6   : > { %680 = vmatprep.mubr.bf16.mxu0 %v1791_v0  ;;  %760 = vmatprep.mubr.bf16.mxu1 %v1791_v0 }
  0xad   : > { %681 = vmatmul.mubr.bf16.gmra.mrb[24].mxu0 %v1635_v29  ;;  %761 = vmatmul.mubr.bf16.gmra.mrb[24].mxu1 %v1636_v30 }
  0xae   : > { %690 = vmatprep.mubr.bf16.mxu0 %v1791_v0  ;;  %770 = vmatprep.mubr.bf16.mxu1 %v1791_v0 }
  0xb5   : > { %691 = vmatmul.mubr.bf16.gmra.mrb[28].mxu0 %v1637_v31  ;;  %771 = vmatmul.mubr.bf16.gmra.mrb[28].mxu1 %v1638_v32 }
 0x150   : > { %v622_v40 = vpop.f32.mrb[0].mxu0  ;;  %v702_v41 = vpop.f32.mrb[0].mxu1 }
 0x151   : > { %v988_v42 = vadd.f32 %v2016_v38, %v622_v40  ;;  %v1020_v43 = vadd.f32 %v2016_v38, %v702_v41  ;;  %v624_v44 = vpop.f32.mrb[1].mxu0  ;;  %v704_v45 = vpop.f32.mrb[1].mxu1 }
 0x152   : > { %v989_v46 = vadd.f32 %v2018_v39, %v624_v44  ;;  %v1021_v47 = vadd.f32 %v2018_v39, %v704_v45  ;;  %v626_v48 = vpop.f32.mrb[2].mxu0  ;;  %v706_v49 = vpop.f32.mrb[2].mxu1 }
 0x153   : > { %v990_v50 = vadd.f32 %v2016_v38, %v626_v48  ;;  %v1022_v51 = vadd.f32 %v2016_v38, %v706_v49  ;;  %v628_v52 = vpop.f32.mrb[3].mxu0  ;;  %v708_v53 = vpop.f32.mrb[3].mxu1 }
 0x154   : > { %v1469_v54 = vpack.c.bf16 %v989_v46, %v988_v42  ;;  %v1485_v55 = vpack.c.bf16 %v1021_v47, %v1020_v43  ;;  %v991_v56 = vadd.f32 %v2018_v39, %v628_v52  ;;  %v1023_v57 = vadd.f32 %v2018_v39, %v708_v53 }
 0x156   : > { %1244 = vst [vmem:[%s2029_s9] sm:$0xff] %v1469_v54  ;;  %1260 = vst [vmem:[%s2029_s9 + $0x80] sm:$0xff] %v1485_v55  ;;  %v1470_v58 = vpack.c.bf16 %v991_v56, %v990_v50  ;;  %v1486_v59 = vpack.c.bf16 %v1023_v57, %v1022_v51 }
 0x158   : > { %1245 = vst [vmem:[%s2029_s9 + $0x8] sm:$0xff] %v1470_v58  ;;  %1261 = vst [vmem:[%s2029_s9 + $0x88] sm:$0xff] %v1486_v59  ;;  %v632_v60 = vpop.f32.mrb[4].mxu0  ;;  %v712_v61 = vpop.f32.mrb[4].mxu1 }
 0x159   : > { %v992_v62 = vadd.f32 %v2016_v38, %v632_v60  ;;  %v1024_v63 = vadd.f32 %v2016_v38, %v712_v61  ;;  %v634_v0 = vpop.f32.mrb[5].mxu0  ;;  %v714_v1 = vpop.f32.mrb[5].mxu1 }
 0x15a   : > { %v993_v2 = vadd.f32 %v2018_v39, %v634_v0  ;;  %v1025_v3 = vadd.f32 %v2018_v39, %v714_v1  ;;  %v636_v4 = vpop.f32.mrb[6].mxu0  ;;  %v716_v5 = vpop.f32.mrb[6].mxu1 }
 0x15b   : > { %v994_v6 = vadd.f32 %v2016_v38, %v636_v4  ;;  %v1026_v7 = vadd.f32 %v2016_v38, %v716_v5  ;;  %v638_v8 = vpop.f32.mrb[7].mxu0  ;;  %v718_v9 = vpop.f32.mrb[7].mxu1 }
 0x15c   : > { %v1471_v10 = vpack.c.bf16 %v993_v2, %v992_v62  ;;  %v1487_v11 = vpack.c.bf16 %v1025_v3, %v1024_v63  ;;  %v995_v12 = vadd.f32 %v2018_v39, %v638_v8  ;;  %v1027_v13 = vadd.f32 %v2018_v39, %v718_v9 }
 0x15e   : > { %1246 = vst [vmem:[%s2029_s9 + $0x10] sm:$0xff] %v1471_v10  ;;  %1262 = vst [vmem:[%s2029_s9 + $0x90] sm:$0xff] %v1487_v11  ;;  %v1472_v14 = vpack.c.bf16 %v995_v12, %v994_v6  ;;  %v1488_v15 = vpack.c.bf16 %v1027_v13, %v1026_v7 }
 0x160   : > { %1247 = vst [vmem:[%s2029_s9 + $0x18] sm:$0xff] %v1472_v14  ;;  %1263 = vst [vmem:[%s2029_s9 + $0x98] sm:$0xff] %v1488_v15  ;;  %v642_v16 = vpop.f32.mrb[8].mxu0  ;;  %v722_v17 = vpop.f32.mrb[8].mxu1 }
 0x161   : > { %v996_v18 = vadd.f32 %v2016_v38, %v642_v16  ;;  %v1028_v19 = vadd.f32 %v2016_v38, %v722_v17  ;;  %v644_v20 = vpop.f32.mrb[9].mxu0  ;;  %v724_v21 = vpop.f32.mrb[9].mxu1 }
 0x162   : > { %v997_v22 = vadd.f32 %v2018_v39, %v644_v20  ;;  %v1029_v23 = vadd.f32 %v2018_v39, %v724_v21  ;;  %v646_v24 = vpop.f32.mrb[10].mxu0  ;;  %v726_v25 = vpop.f32.mrb[10].mxu1 }
 0x163   : > { %v998_v26 = vadd.f32 %v2016_v38, %v646_v24  ;;  %v1030_v27 = vadd.f32 %v2016_v38, %v726_v25  ;;  %v648_v28 = vpop.f32.mrb[11].mxu0  ;;  %v728_v29 = vpop.f32.mrb[11].mxu1 }
 0x164   : > { %v1473_v30 = vpack.c.bf16 %v997_v22, %v996_v18  ;;  %v1489_v31 = vpack.c.bf16 %v1029_v23, %v1028_v19  ;;  %v999_v32 = vadd.f32 %v2018_v39, %v648_v28  ;;  %v1031_v33 = vadd.f32 %v2018_v39, %v728_v29 }
 0x166   : > { %1248 = vst [vmem:[%s2029_s9 + $0x20] sm:$0xff] %v1473_v30  ;;  %1264 = vst [vmem:[%s2029_s9 + $0xa0] sm:$0xff] %v1489_v31  ;;  %v1474_v34 = vpack.c.bf16 %v999_v32, %v998_v26  ;;  %v1490_v35 = vpack.c.bf16 %v1031_v33, %v1030_v27 }
 0x168   : > { %1249 = vst [vmem:[%s2029_s9 + $0x28] sm:$0xff] %v1474_v34  ;;  %1265 = vst [vmem:[%s2029_s9 + $0xa8] sm:$0xff] %v1490_v35  ;;  %v652_v36 = vpop.f32.mrb[12].mxu0  ;;  %v732_v37 = vpop.f32.mrb[12].mxu1 }
 0x169   : > { %v1000_v40 = vadd.f32 %v2016_v38, %v652_v36  ;;  %v1032_v41 = vadd.f32 %v2016_v38, %v732_v37  ;;  %v654_v42 = vpop.f32.mrb[13].mxu0  ;;  %v734_v43 = vpop.f32.mrb[13].mxu1 }
 0x16a   : > { %v1001_v44 = vadd.f32 %v2018_v39, %v654_v42  ;;  %v1033_v45 = vadd.f32 %v2018_v39, %v734_v43  ;;  %v656_v46 = vpop.f32.mrb[14].mxu0  ;;  %v736_v47 = vpop.f32.mrb[14].mxu1 }
 0x16b   : > { %v1002_v48 = vadd.f32 %v2016_v38, %v656_v46  ;;  %v1034_v49 = vadd.f32 %v2016_v38, %v736_v47  ;;  %v658_v50 = vpop.f32.mrb[15].mxu0  ;;  %v738_v51 = vpop.f32.mrb[15].mxu1 }
 0x16c   : > { %v1475_v52 = vpack.c.bf16 %v1001_v44, %v1000_v40  ;;  %v1491_v53 = vpack.c.bf16 %v1033_v45, %v1032_v41  ;;  %v1003_v54 = vadd.f32 %v2018_v39, %v658_v50  ;;  %v1035_v55 = vadd.f32 %v2018_v39, %v738_v51 }
 0x16e   : > { %1250 = vst [vmem:[%s2029_s9 + $0x30] sm:$0xff] %v1475_v52  ;;  %1266 = vst [vmem:[%s2029_s9 + $0xb0] sm:$0xff] %v1491_v53  ;;  %v1476_v56 = vpack.c.bf16 %v1003_v54, %v1002_v48  ;;  %v1492_v57 = vpack.c.bf16 %v1035_v55, %v1034_v49 }
 0x170   : > { %1251 = vst [vmem:[%s2029_s9 + $0x38] sm:$0xff] %v1476_v56  ;;  %1267 = vst [vmem:[%s2029_s9 + $0xb8] sm:$0xff] %v1492_v57  ;;  %v662_v58 = vpop.f32.mrb[16].mxu0  ;;  %v742_v59 = vpop.f32.mrb[16].mxu1 }
 0x171   : > { %v1004_v60 = vadd.f32 %v2016_v38, %v662_v58  ;;  %v1036_v61 = vadd.f32 %v2016_v38, %v742_v59  ;;  %v664_v62 = vpop.f32.mrb[17].mxu0  ;;  %v744_v63 = vpop.f32.mrb[17].mxu1 }
 0x172   : > { %v1005_v0 = vadd.f32 %v2018_v39, %v664_v62  ;;  %v1037_v1 = vadd.f32 %v2018_v39, %v744_v63  ;;  %v666_v2 = vpop.f32.mrb[18].mxu0  ;;  %v746_v3 = vpop.f32.mrb[18].mxu1 }
 0x173   : > { %v1006_v4 = vadd.f32 %v2016_v38, %v666_v2  ;;  %v1038_v5 = vadd.f32 %v2016_v38, %v746_v3  ;;  %v668_v6 = vpop.f32.mrb[19].mxu0  ;;  %v748_v7 = vpop.f32.mrb[19].mxu1 }
 0x174   : > { %v1477_v8 = vpack.c.bf16 %v1005_v0, %v1004_v60  ;;  %v1493_v9 = vpack.c.bf16 %v1037_v1, %v1036_v61  ;;  %v1007_v10 = vadd.f32 %v2018_v39, %v668_v6  ;;  %v1039_v11 = vadd.f32 %v2018_v39, %v748_v7 }
 0x176   : > { %1252 = vst [vmem:[%s2029_s9 + $0x40] sm:$0xff] %v1477_v8  ;;  %1268 = vst [vmem:[%s2029_s9 + $0xc0] sm:$0xff] %v1493_v9  ;;  %v1478_v12 = vpack.c.bf16 %v1007_v10, %v1006_v4  ;;  %v1494_v13 = vpack.c.bf16 %v1039_v11, %v1038_v5 }
 0x178   : > { %1253 = vst [vmem:[%s2029_s9 + $0x48] sm:$0xff] %v1478_v12  ;;  %1269 = vst [vmem:[%s2029_s9 + $0xc8] sm:$0xff] %v1494_v13  ;;  %v672_v14 = vpop.f32.mrb[20].mxu0  ;;  %v752_v15 = vpop.f32.mrb[20].mxu1 }
 0x179   : > { %v1008_v16 = vadd.f32 %v2016_v38, %v672_v14  ;;  %v1040_v17 = vadd.f32 %v2016_v38, %v752_v15  ;;  %v674_v18 = vpop.f32.mrb[21].mxu0  ;;  %v754_v19 = vpop.f32.mrb[21].mxu1 }
 0x17a   : > { %v1009_v20 = vadd.f32 %v2018_v39, %v674_v18  ;;  %v1041_v21 = vadd.f32 %v2018_v39, %v754_v19  ;;  %v676_v22 = vpop.f32.mrb[22].mxu0  ;;  %v756_v23 = vpop.f32.mrb[22].mxu1 }
 0x17b   : > { %v1010_v24 = vadd.f32 %v2016_v38, %v676_v22  ;;  %v1042_v25 = vadd.f32 %v2016_v38, %v756_v23  ;;  %v678_v26 = vpop.f32.mrb[23].mxu0  ;;  %v758_v27 = vpop.f32.mrb[23].mxu1 }
 0x17c   : > { %v1479_v28 = vpack.c.bf16 %v1009_v20, %v1008_v16  ;;  %v1495_v29 = vpack.c.bf16 %v1041_v21, %v1040_v17  ;;  %v1011_v30 = vadd.f32 %v2018_v39, %v678_v26  ;;  %v1043_v31 = vadd.f32 %v2018_v39, %v758_v27 }
 0x17e   : > { %1254 = vst [vmem:[%s2029_s9 + $0x50] sm:$0xff] %v1479_v28  ;;  %1270 = vst [vmem:[%s2029_s9 + $0xd0] sm:$0xff] %v1495_v29  ;;  %v1480_v32 = vpack.c.bf16 %v1011_v30, %v1010_v24  ;;  %v1496_v33 = vpack.c.bf16 %v1043_v31, %v1042_v25 }
 0x180   : > { %1255 = vst [vmem:[%s2029_s9 + $0x58] sm:$0xff] %v1480_v32  ;;  %1271 = vst [vmem:[%s2029_s9 + $0xd8] sm:$0xff] %v1496_v33  ;;  %v682_v34 = vpop.f32.mrb[24].mxu0  ;;  %v762_v35 = vpop.f32.mrb[24].mxu1 }
 0x181   : > { %v1012_v36 = vadd.f32 %v2016_v38, %v682_v34  ;;  %v1044_v37 = vadd.f32 %v2016_v38, %v762_v35  ;;  %v684_v40 = vpop.f32.mrb[25].mxu0  ;;  %v764_v41 = vpop.f32.mrb[25].mxu1 }
 0x182   : > { %v1013_v42 = vadd.f32 %v2018_v39, %v684_v40  ;;  %v1045_v43 = vadd.f32 %v2018_v39, %v764_v41  ;;  %v686_v44 = vpop.f32.mrb[26].mxu0  ;;  %v766_v45 = vpop.f32.mrb[26].mxu1 }
 0x183   : > { %v1014_v46 = vadd.f32 %v2016_v38, %v686_v44  ;;  %v1046_v47 = vadd.f32 %v2016_v38, %v766_v45  ;;  %v688_v48 = vpop.f32.mrb[27].mxu0  ;;  %v768_v49 = vpop.f32.mrb[27].mxu1 }
 0x184   : > { %v1481_v50 = vpack.c.bf16 %v1013_v42, %v1012_v36  ;;  %v1497_v51 = vpack.c.bf16 %v1045_v43, %v1044_v37  ;;  %v1015_v52 = vadd.f32 %v2018_v39, %v688_v48  ;;  %v1047_v53 = vadd.f32 %v2018_v39, %v768_v49 }
 0x186   : > { %1256 = vst [vmem:[%s2029_s9 + $0x60] sm:$0xff] %v1481_v50  ;;  %1272 = vst [vmem:[%s2029_s9 + $0xe0] sm:$0xff] %v1497_v51  ;;  %v1482_v54 = vpack.c.bf16 %v1015_v52, %v1014_v46  ;;  %v1498_v55 = vpack.c.bf16 %v1047_v53, %v1046_v47 }
 0x188   : > { %1257 = vst [vmem:[%s2029_s9 + $0x68] sm:$0xff] %v1482_v54  ;;  %1273 = vst [vmem:[%s2029_s9 + $0xe8] sm:$0xff] %v1498_v55  ;;  %v692_v56 = vpop.f32.mrb[28].mxu0  ;;  %v772_v57 = vpop.f32.mrb[28].mxu1 }
 0x189   : > { %v1016_v58 = vadd.f32 %v2016_v38, %v692_v56  ;;  %v1048_v59 = vadd.f32 %v2016_v38, %v772_v57  ;;  %v694_v60 = vpop.f32.mrb[29].mxu0  ;;  %v774_v61 = vpop.f32.mrb[29].mxu1 }
 0x18a   : > { %v1017_v62 = vadd.f32 %v2018_v39, %v694_v60  ;;  %v1049_v63 = vadd.f32 %v2018_v39, %v774_v61  ;;  %v696_v0 = vpop.f32.mrb[30].mxu0  ;;  %v776_v1 = vpop.f32.mrb[30].mxu1 }
 0x18b   : > { %v1018_v2 = vadd.f32 %v2016_v38, %v696_v0  ;;  %v1050_v3 = vadd.f32 %v2016_v38, %v776_v1  ;;  %v698_v4 = vpop.f32.mrb[31].mxu0  ;;  %v778_v5 = vpop.f32.mrb[31].mxu1 }
 0x18c   : > { %v1483_v6 = vpack.c.bf16 %v1017_v62, %v1016_v58  ;;  %v1499_v7 = vpack.c.bf16 %v1049_v63, %v1048_v59  ;;  %v1019_v8 = vadd.f32 %v2018_v39, %v698_v4  ;;  %v1051_v9 = vadd.f32 %v2018_v39, %v778_v5 }
 0x18e   : > { %1258 = vst [vmem:[%s2029_s9 + $0x70] sm:$0xff] %v1483_v6  ;;  %1274 = vst [vmem:[%s2029_s9 + $0xf0] sm:$0xff] %v1499_v7  ;;  %v1484_v38 = vpack.c.bf16 %v1019_v8, %v1018_v2  ;;  %v1500_v10 = vpack.c.bf16 %v1051_v9, %v1050_v3 }
 0x190   : > { %1259 = vst [vmem:[%s2029_s9 + $0x78] sm:$0xff] %v1484_v38  ;;  %1275 = vst [vmem:[%s2029_s9 + $0xf8] sm:$0xff] %v1500_v10 }
 0x191   : > { %1710 = shalt.err (!%p1707_p5)
}
 0x192   : > { %s1711_s29 = scalar_lea.hbm %s2120_s15, 4096  ;;  %s1715_s20 = scalar_lea.hbm %s2178_s3, 8192 }
 0x193   : > { %p1712_p9 = scmp.ne.s32.totalorder %s2120_s15, %s1711_s29  ;;  %p1716_p3 = scmp.lt.u32.totalorder %s2120_s15, %s2178_s3 }
 0x194   : > { %p1717_p7 = scmp.lt.u32.totalorder %s1715_s20, %s1711_s29  ;;  %p1719_p4 = scmp.lt.u32.totalorder %s1711_s29, %s2120_s15 }
 0x195   : > { %p1713_p1 = pnand %p1712_p9, %p1911_p10 }
 0x196   : > { %p1718_p13 = por %p1717_p7, %p1716_p3 }
 0x197   : > { %p1714_p2 = pneg %p1713_p1 }
 0x198   : > { %p1720_p6 = por %p1719_p4, %p1718_p13 }
 0x19a   : > { %p1721_p8 = pnand %p1720_p6, %p1714_p2 }
 0x19c   : > { %1724 = shalt.err (!%p1721_p8)
}
 0x19d   : > { %s1793_s9 = smov 128   ;;  %s1794_s10 = smov 8  }
 0x19e   : > { %1525 = dma.vmem_to_hbm [thread:$0]  (%p1911_p10), %s2122_s11, 4096, %s2120_s15, %s1277_s7, %s1793_s9, %s1793_s9, %s1794_s10  }
 0x19f PF: > { %s1306_s18 = sand.u32 1, %s1763_s12   ;;  %p2196_p12 = scmp.ne.s32.totalorder %s2186_s23, 0 }
 0x1a0   : > { %p2197_p11 = scmp.ge.s32.totalorder %s1783_s17, 2  ;;  %s1307_s26 = scalar_lea.sflag [#allocation5], %s1306_s18 }
 0x1a2   : > { %p1536_p0 = pnand %p2197_p11, %p2196_p12 }
 0x1a4   : > { %1758 = dma.done.wait (!%p1536_p0), %s1307_s26, 4096  }
 0x1a5   : > { %1760 = vsyncadd (!%p1536_p0), %s1307_s26, 4294963200  ;;  %s20_s17 = sadd.s32 1, %s1783_s17   ;;  %s2198_s12 = smov %s1767_s13 }
 0x1a6   : > { %p17_p5 = scmp.ge.s32.totalorder %s20_s17, 4   ;;  %s2199_s13 = smov %s1771_s14 }
 0x1a7   : > { %s2200_s14 = smov %s1920_s5  ;;  %s2201_s15 = smov %s1779_s16 }
 0x1a8   : > { %s2202_s16 = smov %s2204_s28  ;;  %19 = sbr.rel (!%p17_p5) target bundleno = 7 (0x7), region = 90 }
 0x1af   :  { %1312 = vsyncpa [#allocation4], 1 }
 0x1b0   :  { %1314 = vsyncpa [#allocation4 + $0x1], 1 }
 0x1b1   :  { %1315 = vsyncpa [#allocation7], 1 }
 0x1b2   :  { %1316 = vsyncpa [#allocation5], 1 }
 0x1b3   :  { %1318 = vsyncpa [#allocation5 + $0x1], 1 }

</bundles_post_ra>
